<compile_context>
chip_gen: v5e
topology: v5e:2x2
jax: 0.10.0
libtpu: 0.0.40
codegen_flags: <defaults>
</compile_context>

<pallas_src>
import jax
import jax.numpy as jnp
from jax.experimental import pallas as pl
from jax.experimental.pallas import tpu as pltpu


def _round_up(x: int, m: int) -> int:
    return ((x + m - 1) // m) * m


def _copy_kernel(x_ref, o_ref):
    # Pure pipelined tile copy.  The chomp already happened in the BlockSpecs:
    # the grid only covers the first L_out columns of the input.
    o_ref[...] = x_ref[...]


def chomp1d(x: jax.Array, chomp_size: int, *, row_tile: int = 512,
            lane_tile: int = 1024) -> jax.Array:
    """Pallas equivalent of Chomp1d.forward: x[:, :, :-chomp_size]."""
    n, c, l = x.shape
    assert 0 < chomp_size < l, "need 0 < chomp_size < L so that L_out > 0"
    l_out = l - chomp_size

    # Flatten (N, C, L) -> (N*C, L): free for a contiguous row-major array and
    # gives a 2-D grid with many steps instead of one huge (C, L) slab per batch.
    rows = n * c
    x2 = x.reshape(rows, l)

    # Dtype-aware sublane multiple: 8 for f32, 16 for bf16/f16, 32 for int8/fp8.
    itemsize = jnp.dtype(x.dtype).itemsize
    sub_mult = 8 * max(1, 4 // itemsize)

    # Row tile: clamp to the array, keep it a multiple of the sublane packing.
    tr = _round_up(min(row_tile, rows), sub_mult)
    # Lane tile: lane-dense (multiple of 128); only the final ragged tile (if
    # l_out % tl != 0) uses masked stores.
    tl = _round_up(min(lane_tile, l_out), 128)

    grid = (pl.cdiv(rows, tr), pl.cdiv(l_out, tl))

    out2 = pl.pallas_call(
        _copy_kernel,
        out_shape=jax.ShapeDtypeStruct((rows, l_out), x.dtype),
        grid=grid,
        # Input blocks index into the full-length (rows, L) array, but the grid
        # only spans cdiv(l_out, tl) lane tiles -> the chomped tail is skipped.
        in_specs=[pl.BlockSpec((tr, tl), lambda ri, li: (ri, li))],
        out_specs=pl.BlockSpec((tr, tl), lambda ri, li: (ri, li)),
        compiler_params=pltpu.CompilerParams(
            # Two parallel axes so v7x's dual TensorCores both get work.
            dimension_semantics=("parallel", "parallel"),
        ),
    )(x2)

    return out2.reshape(n, c, l_out)


if __name__ == "__main__":
    # Chomp1d has no parameters; only the chomp_size hyperparameter.
    chomp_size = 2

    key = jax.random.PRNGKey(0)
    # Small Conv1d-style input: (batch=2, channels=4, length=16)
    x = jax.random.normal(key, (2, 4, 16), dtype=jnp.float32)

    out = jax.block_until_ready(chomp1d(x, chomp_size))

    # Reference check against plain JAX slicing (same semantics as PyTorch).
    ref = x[:, :, :-chomp_size]
    assert out.shape == ref.shape, (out.shape, ref.shape)
    assert out.dtype == ref.dtype
    assert jnp.array_equal(out, ref), "Pallas Chomp1d output mismatch"

    print("KERNEL_OK")
</pallas_src>

<mosaic_0001>
module attributes {stable_mosaic.version = 11 : i64} {
  func.func @_copy_kernel(%arg0: i32, %arg1: i32, %arg2: memref<8x128xf32, #tpu.memory_space<vmem>>, %arg3: memref<8x128xf32, #tpu.memory_space<vmem>>) attributes {dimension_semantics = [#tpu.dimension_semantics<parallel>, #tpu.dimension_semantics<parallel>], iteration_bounds = array<i64: 1, 1>, scalar_prefetch = 0 : i64, scratch_operands = 0 : i64, tpu.core_type = #tpu.core_type<tc>, window_params = [{transform_indices = @transform_0, window_bounds = array<i64: 8, 128>}, {transform_indices = @transform_1, window_bounds = array<i64: 8, 128>}]} {
    %c0 = arith.constant 0 : index
    %c0_0 = arith.constant 0 : index
    %0 = vector.load %arg2[%c0, %c0_0] : memref<8x128xf32, #tpu.memory_space<vmem>>, vector<8x128xf32>
    %c0_1 = arith.constant 0 : index
    %c0_2 = arith.constant 0 : index
    %1 = vector.load %arg3[%c0_1, %c0_2] : memref<8x128xf32, #tpu.memory_space<vmem>>, vector<8x128xf32>
    tpu.vector_store %arg3[%c0_1, %c0_2], %0 {strides = array<i32>} : memref<8x128xf32, #tpu.memory_space<vmem>>, vector<8x128xf32>,
    return
  }
  func.func @transform_0(%arg0: i32, %arg1: i32) -> (i32, i32) {
    %c0_i32 = arith.constant 0 : i32
    return %arg0, %arg1 : i32, i32
  }
  func.func @transform_1(%arg0: i32, %arg1: i32) -> (i32, i32) {
    %c0_i32 = arith.constant 0 : i32
    return %arg0, %arg1 : i32, i32
  }
}

</mosaic_0001>

<bundles_post_ra>
// kernel: tpu_custom_call.1
= control target key start
LH: loop header
LB: loop body
LE: loop exit
PB: predicated region body
PF: predicated region fallthrough
CT: control target
= control target key end

     0   :  { %6 = vsyncpa [#allocation3], 0  ;;  %s114_s0 = inlined_call_operand.hbm [shape: f32[8,16], index: 0, kind: input, shape index: {}]   ;;  %s115_s1 = inlined_call_operand.hbm [shape: f32[8,14], index: 1, kind: output, shape index: {}]  }
   0x1   :  { %7 = vsyncpa [#allocation4], 0  ;;  %s13_s8 = sshll.u32 %s114_s0, 4  ;;  %s96_s9 = smov [#allocation2]   ;;  %s14_s8 = int_to_ptr.hbm [resolvable:$true] %s13_s8 }
   0x2   :  { %s15_s10 = sshll.u32 %s96_s9, 4  ;;  %s16_s10 = int_to_ptr.vmem [resolvable:$true] %s15_s10 }
   0x3   :  { %18 = dma.hbm_to_vmem [thread:$0]  %s14_s8, 128, %s16_s10, [#allocation3]  }
   0x4   :  { %92 = dma.done.wait [#allocation3], 128  }
   0x5   :  { %93 = vsyncadd [#allocation3], 4294967168  ;;  %s97_s11 = smov [#allocation5]   ;;  %s32_s15 = sshll.u32 %s115_s1, 4  ;;  %v23_v0 = vld [vmem:[#allocation2] sm:$0xff]  ;;  %s33_s15 = int_to_ptr.hbm [resolvable:$true] %s32_s15 }
   0x6   :  { %s30_s12 = sshll.u32 %s97_s11, 4  ;;  %24 = vst [vmem:[#allocation5] sm:$0xff] %v23_v0  ;;  %s31_s12 = int_to_ptr.vmem [resolvable:$true] %s30_s12 }
   0x7   :  { %35 = dma.vmem_to_hbm [thread:$0]  %s31_s12, 128, %s33_s15, [#allocation4]  }
   0x8   :  { %94 = dma.done.wait [#allocation4], 128  }
   0x9   :  { %95 = vsyncadd [#allocation4], 4294967168 }
   0xa   :  { %40 = vsyncpa [#allocation3], 1 }
   0xb   :  { %41 = vsyncpa [#allocation4], 1 }

</bundles_post_ra>
